<compile_context>
chip_gen: v5e
topology: v5e:2x2
jax: 0.10.0
libtpu: 0.0.40
codegen_flags: <defaults>
</compile_context>

<pallas_src>
import math

import jax
import jax.numpy as jnp
from jax.experimental import pallas as pl
from jax.experimental.pallas import tpu as pltpu


def layerscale_kernel(x_ref, alpha_ref, o_ref):
    # x_ref: (TR, D_eff) tile, alpha_ref: (1, D_eff) -> broadcasts over rows.
    # astype is a no-op when x already has the output dtype.
    o_ref[...] = x_ref[...].astype(o_ref.dtype) * alpha_ref[...]


def _vmem_plan():
    """Generation-aware (per-step in+out byte budget, vmem_limit_bytes)."""
    try:
        phys = pltpu.get_tpu_info().vmem_capacity_bytes
    except Exception:
        phys = 64 * 1024 * 1024  # assume the most restrictive generation (v7x per TC)
    if phys >= 100 * 1024 * 1024:
        # v5e / v6e: 128 MiB physical -> large steps, generous scoped limit.
        return 16 * 1024 * 1024, 48 * 1024 * 1024
    # v7x: 64 MiB physical / 32 MiB scoped default -> keep 2x(in+out)+alpha well
    # under ~48 MiB; prefer one large tile per step over deeper buffering.
    return 16 * 1024 * 1024, 40 * 1024 * 1024


def _lane_fold_factor(rows, d):
    """Fold k consecutive rows into the lane dim so the last dim is a multiple of 128
    (lane-dense unmasked vst).  The reshape is metadata-only; falls back to k=1 when
    rows is not divisible by the required factor."""
    if rows == 0 or d == 0:
        return 1
    if d % 128 != 0:
        k = 128 // math.gcd(d, 128)
        return k if rows % k == 0 else 1
    # Already lane aligned: widen modest D for larger contiguous DMA rows.
    k = 8 if d <= 512 else 1
    while k > 1 and rows % k != 0:
        k //= 2
    return max(k, 1)


def _choose_tile_rows(rows, d, in_itemsize, out_itemsize, step_budget, min_steps=4):
    """Row tile so one pipeline step's (input + output) bytes ~= step_budget."""
    # Sublane alignment from the narrowest participating dtype's native packing:
    # 8 for 32-bit, 16 for bf16, 32 for 8-bit types.
    align = max(8, 32 // max(1, min(in_itemsize, out_itemsize)))
    bytes_per_row = d * (in_itemsize + out_itemsize)  # budget input AND output
    tr = max(align, (step_budget // max(1, bytes_per_row)) // align * align)
    # Keep >= min_steps grid steps so both v7x TensorCores get work under
    # dimension_semantics=("parallel",); harmless on 1-TC v5e/v6e.
    cap = max(align, (rows // min_steps) // align * align)
    tr = min(tr, cap)
    if tr >= rows:
        return rows  # full extent is always a legal block shape
    return tr


def layer_scale(x, alpha, *, out_dtype=None, donate=False):
    """x: (..., D) array, alpha: (D,) learned scale. Returns x * alpha (broadcast)."""
    orig_shape = x.shape
    D = orig_shape[-1]
    assert alpha.shape == (D,), f"alpha must be ({D},), got {alpha.shape}"

    if out_dtype is None:
        # Match PyTorch promotion semantics (e.g. bf16 activations * f32 param -> f32).
        out_dtype = jnp.result_type(x.dtype, alpha.dtype)

    rows = 1
    for s in orig_shape[:-1]:
        rows *= s

    if rows == 0 or D == 0:
        return jnp.zeros(orig_shape, out_dtype)  # empty input: no kernel launch

    # Lane-dense folding (metadata-only reshape) + alpha tiled k times (k*D elems).
    k = _lane_fold_factor(rows, D)
    rows_eff, d_eff = rows // k, k * D
    x2d = x.reshape(rows_eff, d_eff)
    alpha_eff = jnp.tile(alpha.astype(out_dtype), k).reshape(1, d_eff)

    in_isz = jnp.dtype(x.dtype).itemsize
    out_isz = jnp.dtype(out_dtype).itemsize
    step_budget, vmem_limit = _vmem_plan()
    tr = _choose_tile_rows(rows_eff, d_eff, in_isz, out_isz, step_budget)
    grid = (pl.cdiv(rows_eff, tr),)

    # Donation only helps footprint (same bandwidth); only legal when dtypes match.
    aliases = {0: 0} if (donate and x.dtype == jnp.dtype(out_dtype)) else {}

    out2d = pl.pallas_call(
        layerscale_kernel,
        out_shape=jax.ShapeDtypeStruct((rows_eff, d_eff), out_dtype),
        grid_spec=pltpu.PrefetchScalarGridSpec(
            num_scalar_prefetch=0,
            grid=grid,
            in_specs=[
                pl.BlockSpec((tr, d_eff), lambda i: (i, 0)),   # streamed row tiles
                pl.BlockSpec((1, d_eff), lambda i: (0, 0)),    # alpha resident, reused
            ],
            out_specs=pl.BlockSpec((tr, d_eff), lambda i: (i, 0)),
        ),
        compiler_params=pltpu.CompilerParams(
            dimension_semantics=("parallel",),   # row grid shardable across TCs (v7x)
            vmem_limit_bytes=vmem_limit,
        ),
        input_output_aliases=aliases,
    )(x2d, alpha_eff)

    return out2d.reshape(orig_shape)


if __name__ == "__main__":
    # Module-faithful small shapes: batch=2, seq=8, d_model=128.
    B, S, D = 2, 8, 128
    key = jax.random.PRNGKey(0)
    kx, ka, kx2 = jax.random.split(key, 3)

    # Parameter init identical to nn.Parameter(torch.ones(d_model)).
    x = jax.random.normal(kx, (B, S, D), dtype=jnp.float32)
    alpha = jnp.ones((D,), dtype=jnp.float32)
    out = jax.block_until_ready(layer_scale(x, alpha))
    ref = x * alpha[None, None, :]
    assert out.shape == ref.shape and out.dtype == ref.dtype
    assert jnp.allclose(out, ref, atol=1e-6), "mismatch vs reference (f32, D=128)"

    # Extra coverage: learned (non-unit) alpha + bf16 activations (promotes to f32).
    alpha2 = jax.random.normal(ka, (D,), dtype=jnp.float32)
    xb = jax.random.normal(kx2, (B, S, D), dtype=jnp.bfloat16)
    out2 = jax.block_until_ready(layer_scale(xb, alpha2))
    ref2 = xb * alpha2[None, None, :]
    assert out2.dtype == jnp.float32
    assert jnp.allclose(out2, ref2, atol=1e-6), "mismatch vs reference (bf16 in)"

    # Extra coverage: d_model not a multiple of 128 (exercises lane folding).
    D3 = 96
    x3 = jax.random.normal(kx, (B, S, D3), dtype=jnp.float32)
    alpha3 = jax.random.normal(ka, (D3,), dtype=jnp.float32)
    out3 = jax.block_until_ready(layer_scale(x3, alpha3))
    ref3 = x3 * alpha3[None, None, :]
    assert jnp.allclose(out3, ref3, atol=1e-6), "mismatch vs reference (D=96)"

    print("KERNEL_OK")
</pallas_src>

<mosaic_0001>
module attributes {stable_mosaic.version = 11 : i64} {
  func.func @layerscale_kernel(%arg0: i32, %arg1: memref<2x1024xf32, #tpu.memory_space<vmem>>, %arg2: memref<1x1024xf32, #tpu.memory_space<vmem>>, %arg3: memref<2x1024xf32, #tpu.memory_space<vmem>>) attributes {dimension_semantics = [#tpu.dimension_semantics<parallel>], iteration_bounds = array<i64: 1>, scalar_prefetch = 0 : i64, scratch_operands = 0 : i64, tpu.core_type = #tpu.core_type<tc>, window_params = [{transform_indices = @transform_0, window_bounds = array<i64: 2, 1024>}, {pipeline_mode = #tpu.pipeline_mode<synchronous>, transform_indices = @transform_1, window_bounds = array<i64: 1, 1024>}, {transform_indices = @transform_2, window_bounds = array<i64: 2, 1024>}]} {
    %c0 = arith.constant 0 : index
    %c0_0 = arith.constant 0 : index
    %0 = vector.load %arg1[%c0, %c0_0] : memref<2x1024xf32, #tpu.memory_space<vmem>>, vector<2x1024xf32>
    %c0_1 = arith.constant 0 : index
    %c0_2 = arith.constant 0 : index
    %1 = vector.load %arg2[%c0_1, %c0_2] : memref<1x1024xf32, #tpu.memory_space<vmem>>, vector<1x1024xf32>
    %2 = vector.broadcast %1 : vector<1x1024xf32> to vector<2x1024xf32>
    %3 = arith.mulf %0, %2 : vector<2x1024xf32>
    %c0_3 = arith.constant 0 : index
    %c0_4 = arith.constant 0 : index
    %4 = vector.load %arg3[%c0_3, %c0_4] : memref<2x1024xf32, #tpu.memory_space<vmem>>, vector<2x1024xf32>
    tpu.vector_store %arg3[%c0_3, %c0_4], %3 {strides = array<i32>} : memref<2x1024xf32, #tpu.memory_space<vmem>>, vector<2x1024xf32>,
    return
  }
  func.func @transform_0(%arg0: i32) -> (i32, i32) {
    %c0_i32 = arith.constant 0 : i32
    %c0_i32_0 = arith.constant 0 : i32
    return %arg0, %c0_i32 : i32, i32
  }
  func.func @transform_1(%arg0: i32) -> (i32, i32) {
    %c0_i32 = arith.constant 0 : i32
    %c0_i32_0 = arith.constant 0 : i32
    %c0_i32_1 = arith.constant 0 : i32
    return %c0_i32, %c0_i32_0 : i32, i32
  }
  func.func @transform_2(%arg0: i32) -> (i32, i32) {
    %c0_i32 = arith.constant 0 : i32
    %c0_i32_0 = arith.constant 0 : i32
    return %arg0, %c0_i32 : i32, i32
  }
}

</mosaic_0001>

<bundles_post_ra>
// kernel: tpu_custom_call.1
= control target key start
LH: loop header
LB: loop body
LE: loop exit
PB: predicated region body
PF: predicated region fallthrough
CT: control target
= control target key end

     0   :  { %7 = vsyncpa [#allocation3], 0  ;;  %s203_s0 = inlined_call_operand.hbm [shape: f32[2,1024], index: 0, kind: input, shape index: {}]   ;;  %s204_s1 = inlined_call_operand.hbm [shape: f32[1,1024], index: 1, kind: input, shape index: {}]   ;;  %s205_s2 = inlined_call_operand.hbm [shape: f32[2,1024], index: 2, kind: output, shape index: {}]  }
   0x1   :  { %8 = vsyncpa [#allocation6], 0 }
   0x2   :  { %9 = vsyncpa [#allocation4], 0  ;;  %s15_s11 = sshll.u32 %s203_s0, 4  ;;  %s172_s12 = smov [#allocation2]   ;;  %s16_s11 = int_to_ptr.hbm [resolvable:$true] %s15_s11 }
   0x3   :  { %s17_s13 = sshll.u32 %s172_s12, 4  ;;  %s26_s16 = sshll.u32 %s204_s1, 4  ;;  %s18_s13 = int_to_ptr.vmem [resolvable:$true] %s17_s13  ;;  %s27_s16 = int_to_ptr.hbm [resolvable:$true] %s26_s16 }
   0x4   :  { %20 = dma.hbm_to_vmem [thread:$0]  %s16_s11, 256, %s18_s13, [#allocation3]  }
   0x5   :  { %s173_s17 = smov [#allocation5]  }
   0x6   :  { %s28_s18 = sshll.u32 %s173_s17, 4  ;;  %s29_s18 = int_to_ptr.vmem [resolvable:$true] %s28_s18 }
   0x7   :  { %31 = dma.hbm_to_vmem [thread:$0]  %s27_s16, 128, %s29_s18, [#allocation6]  }
   0x8   :  { %166 = dma.done.wait [#allocation3], 256  }
   0x9   :  { %167 = vsyncadd [#allocation3], 4294967040 }
   0xa   :  { %168 = dma.done.wait [#allocation6], 128  }
   0xb   :  { %169 = vsyncadd [#allocation6], 4294967168  ;;  %v42_v0 = vld [vmem:[#allocation5] sm:$0xff]  ;;  %vm58_vm0 = vcmask 1041408   ;;  %vm60_vm1 = vcmask 1045508   ;;  %vm62_vm2 = vcmask 1043456  }
   0xc   :  { %v44_v1 = vperm.slane %v42_v0, 0  ;;  %v45_v2 = vperm.slane %v42_v0, 1  ;;  %v46_v3 = vperm.slane %v42_v0, 2  ;;  %v47_v4 = vperm.slane %v42_v0, 3  ;;  %v40_v12 = vld [vmem:[#allocation2] sm:$0xff]  ;;  %v41_v18 = vld [vmem:[#allocation2 + $0x8] sm:$0xff] }
   0xd   :  { %v48_v5 = vperm.slane %v42_v0, 4  ;;  %v49_v6 = vperm.slane %v42_v0, 5  ;;  %v50_v7 = vperm.slane %v42_v0, 6  ;;  %v51_v8 = vperm.slane %v42_v0, 7  ;;  %s174_s0 = smov [#allocation7]   ;;  %s80_s21 = sshll.u32 %s205_s2, 4  ;;  %s81_s21 = int_to_ptr.hbm [resolvable:$true] %s80_s21 }
   0xe   :  { %v52_v9 = vrot.slane %v45_v2, 6  ;;  %v53_v10 = vrot.slane %v46_v3, 4  ;;  %v54_v11 = vrot.slane %v47_v4, 2  ;;  %s78_s1 = sshll.u32 %s174_s0, 4  ;;  %s79_s1 = int_to_ptr.vmem [resolvable:$true] %s78_s1 }
   0xf   :  { %v55_v13 = vrot.slane %v49_v6, 6  ;;  %v56_v14 = vrot.slane %v50_v7, 4  ;;  %v57_v15 = vrot.slane %v51_v8, 2 }
  0x10   :  { %v59_v16 = vsel %vm58_vm0, %v44_v1, %v52_v9  ;;  %v61_v17 = vsel %vm60_vm1, %v53_v10, %v54_v11 }
  0x11   :  { %v63_v19 = vsel %vm62_vm2, %v59_v16, %v61_v17  ;;  %v64_v20 = vsel %vm58_vm0, %v48_v5, %v55_v13  ;;  %v65_v21 = vsel %vm60_vm1, %v56_v14, %v57_v15 }
  0x12   :  { %v69_v22 = vmul.f32 %v63_v19, %v40_v12  ;;  %v66_v23 = vsel %vm62_vm2, %v64_v20, %v65_v21 }
  0x13   :  { %v70_v24 = vmul.f32 %v66_v23, %v41_v18 }
  0x14   :  { %71 = vst [vmem:[#allocation7] sm:$0xff] %v69_v22 }
  0x15   :  { %72 = vst [vmem:[#allocation7 + $0x8] sm:$0xff] %v70_v24 }
  0x16   :  { %83 = dma.vmem_to_hbm [thread:$0]  %s79_s1, 256, %s81_s21, [#allocation4]  }
  0x17   :  { %170 = dma.done.wait [#allocation4], 256  }
  0x18   :  { %171 = vsyncadd [#allocation4], 4294967040 }
  0x19   :  { %88 = vsyncpa [#allocation3], 1 }
  0x1a   :  { %89 = vsyncpa [#allocation6], 1 }
  0x1b   :  { %90 = vsyncpa [#allocation4], 1 }

</bundles_post_ra>
